<compile_context>
chip_gen: v6e
topology: v6e:2x2x1
jax: 0.10.0
libtpu: 0.0.40
codegen_flags: <defaults>
</compile_context>

<pallas_src>
import functools

import jax
import jax.numpy as jnp
from jax.experimental import pallas as pl
from jax.experimental.pallas import tpu as pltpu


def _attention_kernel(x_ref, wq_ref, wk_ref, wv_ref, bq_ref, bk_ref, bv_ref,
                      wp_ref, bp_ref, o_ref, *, num_heads, head_dim,
                      compute_dtype):
    N = x_ref.shape[1]
    C = num_heads * head_dim

    def mxu(a):  # cast MXU operands (no-op for f32), accumulation stays f32
        return a.astype(compute_dtype)

    x = mxu(x_ref[0])                                            # (N, C)

    # Q/K/V projections.  The softmax scale is already folded into wq/bq.
    q = jnp.dot(x, wq_ref[...], preferred_element_type=jnp.float32) + bq_ref[...]
    k = jnp.dot(x, wk_ref[...], preferred_element_type=jnp.float32) + bk_ref[...]
    v = jnp.dot(x, wv_ref[...], preferred_element_type=jnp.float32) + bv_ref[...]

    # Single reshape/transpose into head-batched (H, N, D) layout.
    qh = jnp.transpose(q.reshape(N, num_heads, head_dim), (1, 0, 2))
    kh = jnp.transpose(k.reshape(N, num_heads, head_dim), (1, 0, 2))
    vh = jnp.transpose(v.reshape(N, num_heads, head_dim), (1, 0, 2))

    # logits[h, i, j] = sum_d qh[h, i, d] * kh[h, j, d]   (no explicit K^T copy)
    logits = jax.lax.dot_general(
        mxu(qh), mxu(kh),
        dimension_numbers=(((2,), (2,)), ((0,), (0,))),
        preferred_element_type=jnp.float32)                      # (H, N, N) f32

    # Softmax in f32 with max-subtraction; reciprocal on the EUP.
    logits = logits - jnp.max(logits, axis=-1, keepdims=True)
    p = jnp.exp(logits)
    denom = jnp.sum(p, axis=-1, keepdims=True)
    p = p * pl.reciprocal(denom, approx=True)

    # ctx[h, i, d] = sum_j p[h, i, j] * vh[h, j, d]
    ctx = jax.lax.dot_general(
        mxu(p), mxu(vh),
        dimension_numbers=(((2,), (1,)), ((0,), (0,))),
        preferred_element_type=jnp.float32)                      # (H, N, D) f32

    out = jnp.transpose(ctx, (1, 0, 2)).reshape(N, C)            # (N, C), head-major cols

    y = jnp.dot(mxu(out), wp_ref[...], preferred_element_type=jnp.float32)
    y = y + bp_ref[...]
    o_ref[0] = y.astype(o_ref.dtype)


def attention_pallas(x, w_qkv, b_qkv, w_proj, b_proj, *, num_heads,
                     compute_dtype=None):
    """x: (B, N, C); weights stored as (in, out) == torch weight.T; biases (1, out)."""
    B, N, C = x.shape
    assert C % num_heads == 0
    head_dim = C // num_heads
    scale = head_dim ** (-0.5)
    if compute_dtype is None:
        compute_dtype = x.dtype

    # Trace-time constant transforms: split qkv weights, fold the scale into the
    # Q projection, cast MXU weight operands to compute_dtype (biases stay f32).
    w_q = (w_qkv[:, :C] * scale).astype(compute_dtype)
    w_k = w_qkv[:, C:2 * C].astype(compute_dtype)
    w_v = w_qkv[:, 2 * C:].astype(compute_dtype)
    b_q = (b_qkv[:, :C] * scale).astype(jnp.float32)
    b_k = b_qkv[:, C:2 * C].astype(jnp.float32)
    b_v = b_qkv[:, 2 * C:].astype(jnp.float32)
    w_p = w_proj.astype(compute_dtype)
    b_p = b_proj.astype(jnp.float32)

    kernel = functools.partial(_attention_kernel,
                               num_heads=num_heads,
                               head_dim=head_dim,
                               compute_dtype=compute_dtype)

    rep = lambda b: (0, 0)  # weights/biases: same (full) block every grid step
    grid_spec = pltpu.PrefetchScalarGridSpec(
        num_scalar_prefetch=0,
        grid=(B,),
        in_specs=[
            pl.BlockSpec((1, N, C), lambda b: (b, 0, 0)),        # x (per-batch tile)
            pl.BlockSpec((C, C), rep),                            # w_q (scale folded)
            pl.BlockSpec((C, C), rep),                            # w_k
            pl.BlockSpec((C, C), rep),                            # w_v
            pl.BlockSpec((1, C), rep),                            # b_q (scale folded)
            pl.BlockSpec((1, C), rep),                            # b_k
            pl.BlockSpec((1, C), rep),                            # b_v
            pl.BlockSpec((C, C), rep),                            # w_proj
            pl.BlockSpec((1, C), rep),                            # b_proj
        ],
        out_specs=pl.BlockSpec((1, N, C), lambda b: (b, 0, 0)),
    )

    return pl.pallas_call(
        kernel,
        out_shape=jax.ShapeDtypeStruct((B, N, C), x.dtype),
        grid_spec=grid_spec,
        compiler_params=pltpu.CompilerParams(
            dimension_semantics=("parallel",)),
    )(x, w_q, w_k, w_v, b_q, b_k, b_v, w_p, b_p)


def attention_reference(x, w_qkv, b_qkv, w_proj, b_proj, *, num_heads):
    """Pure-JAX reference matching the PyTorch forward exactly."""
    B, N, C = x.shape
    head_dim = C // num_heads
    scale = head_dim ** (-0.5)
    qkv = x @ w_qkv + b_qkv[0]                                   # (B, N, 3C)
    qkv = qkv.reshape(B, N, 3, num_heads, head_dim)
    qkv = jnp.transpose(qkv, (2, 0, 3, 1, 4))                    # (3, B, H, N, D)
    q, k, v = qkv[0], qkv[1], qkv[2]
    attn = jnp.einsum('bhqd,bhkd->bhqk', q, k) * scale
    attn = jax.nn.softmax(attn, axis=-1)
    out = jnp.einsum('bhqk,bhkd->bhqd', attn, v)
    out = jnp.transpose(out, (0, 2, 1, 3)).reshape(B, N, C)
    return out @ w_proj + b_proj[0]


if __name__ == "__main__":
    # Small shapes consistent with the module: dim=C=32, num_heads=8 -> head_dim=4.
    B, N, C = 2, 8, 32
    num_heads = 8

    key = jax.random.PRNGKey(0)
    kx, k1, k2, k3, k4 = jax.random.split(key, 5)

    x = jax.random.normal(kx, (B, N, C), dtype=jnp.float32)
    # Parameters stored as (in, out) == torch weight.T.
    w_qkv = 0.02 * jax.random.normal(k1, (C, 3 * C), dtype=jnp.float32)
    b_qkv = 0.01 * jax.random.normal(k2, (1, 3 * C), dtype=jnp.float32)
    w_proj = 0.02 * jax.random.normal(k3, (C, C), dtype=jnp.float32)
    b_proj = 0.01 * jax.random.normal(k4, (1, C), dtype=jnp.float32)

    ref = attention_reference(x, w_qkv, b_qkv, w_proj, b_proj, num_heads=num_heads)

    # f32 MXU operands (the approximate EUP reciprocal is the only approximation).
    out = attention_pallas(x, w_qkv, b_qkv, w_proj, b_proj, num_heads=num_heads)
    out = jax.block_until_ready(out)
    assert out.shape == (B, N, C)
    assert jnp.allclose(out, ref, atol=1e-3, rtol=1e-3), "f32 mismatch vs JAX reference"

    # bf16 MXU operands with f32 accumulation (fast path for production shapes).
    out_bf16 = attention_pallas(x, w_qkv, b_qkv, w_proj, b_proj,
                                num_heads=num_heads, compute_dtype=jnp.bfloat16)
    out_bf16 = jax.block_until_ready(out_bf16)
    assert jnp.allclose(out_bf16, ref, atol=5e-3, rtol=5e-2), "bf16 mismatch vs JAX reference"

    print("KERNEL_OK")
</pallas_src>

<mosaic_0001>
module attributes {stable_mosaic.version = 11 : i64} {
  func.func @_attention_kernel(%arg0: i32, %arg1: memref<1x8x32xf32, #tpu.memory_space<vmem>>, %arg2: memref<32x32xf32, #tpu.memory_space<vmem>>, %arg3: memref<32x32xf32, #tpu.memory_space<vmem>>, %arg4: memref<32x32xf32, #tpu.memory_space<vmem>>, %arg5: memref<1x32xf32, #tpu.memory_space<vmem>>, %arg6: memref<1x32xf32, #tpu.memory_space<vmem>>, %arg7: memref<1x32xf32, #tpu.memory_space<vmem>>, %arg8: memref<32x32xf32, #tpu.memory_space<vmem>>, %arg9: memref<1x32xf32, #tpu.memory_space<vmem>>, %arg10: memref<1x8x32xf32, #tpu.memory_space<vmem>>) attributes {dimension_semantics = [#tpu.dimension_semantics<parallel>], iteration_bounds = array<i64: 2>, scalar_prefetch = 0 : i64, scratch_operands = 0 : i64, tpu.core_type = #tpu.core_type<tc>, window_params = [{transform_indices = @transform_0, window_bounds = array<i64: 1, 8, 32>}, {pipeline_mode = #tpu.pipeline_mode<synchronous>, transform_indices = @transform_1, window_bounds = array<i64: 32, 32>}, {pipeline_mode = #tpu.pipeline_mode<synchronous>, transform_indices = @transform_2, window_bounds = array<i64: 32, 32>}, {pipeline_mode = #tpu.pipeline_mode<synchronous>, transform_indices = @transform_3, window_bounds = array<i64: 32, 32>}, {pipeline_mode = #tpu.pipeline_mode<synchronous>, transform_indices = @transform_4, window_bounds = array<i64: 1, 32>}, {pipeline_mode = #tpu.pipeline_mode<synchronous>, transform_indices = @transform_5, window_bounds = array<i64: 1, 32>}, {pipeline_mode = #tpu.pipeline_mode<synchronous>, transform_indices = @transform_6, window_bounds = array<i64: 1, 32>}, {pipeline_mode = #tpu.pipeline_mode<synchronous>, transform_indices = @transform_7, window_bounds = array<i64: 32, 32>}, {pipeline_mode = #tpu.pipeline_mode<synchronous>, transform_indices = @transform_8, window_bounds = array<i64: 1, 32>}, {transform_indices = @transform_9, window_bounds = array<i64: 1, 8, 32>}]} {
    %c0 = arith.constant 0 : index
    %c0_0 = arith.constant 0 : index
    %c0_1 = arith.constant 0 : index
    %0 = vector.load %arg1[%c0, %c0_0, %c0_1] : memref<1x8x32xf32, #tpu.memory_space<vmem>>, vector<1x8x32xf32>
    %1 = vector.shape_cast %0 : vector<1x8x32xf32> to vector<8x32xf32>
    %c0_2 = arith.constant 0 : index
    %c0_3 = arith.constant 0 : index
    %2 = vector.load %arg2[%c0_2, %c0_3] : memref<32x32xf32, #tpu.memory_space<vmem>>, vector<32x32xf32>
    %cst = arith.constant dense<0.000000e+00> : vector<8x32xf32>
    %3 = tpu.matmul %1, %2, %cst {dimension_numbers = #tpu.dot_dimension_numbers<[1], [0], [0], [1], [0, 0, 1, 1], [], []>} : vector<8x32xf32>, vector<32x32xf32>, vector<8x32xf32> -> vector<8x32xf32>
    %c0_4 = arith.constant 0 : index
    %c0_5 = arith.constant 0 : index
    %4 = vector.load %arg5[%c0_4, %c0_5] : memref<1x32xf32, #tpu.memory_space<vmem>>, vector<1x32xf32>
    %5 = vector.broadcast %4 : vector<1x32xf32> to vector<8x32xf32>
    %6 = arith.addf %3, %5 : vector<8x32xf32>
    %c0_6 = arith.constant 0 : index
    %c0_7 = arith.constant 0 : index
    %7 = vector.load %arg3[%c0_6, %c0_7] : memref<32x32xf32, #tpu.memory_space<vmem>>, vector<32x32xf32>
    %cst_8 = arith.constant dense<0.000000e+00> : vector<8x32xf32>
    %8 = tpu.matmul %1, %7, %cst_8 {dimension_numbers = #tpu.dot_dimension_numbers<[1], [0], [0], [1], [0, 0, 1, 1], [], []>} : vector<8x32xf32>, vector<32x32xf32>, vector<8x32xf32> -> vector<8x32xf32>
    %c0_9 = arith.constant 0 : index
    %c0_10 = arith.constant 0 : index
    %9 = vector.load %arg6[%c0_9, %c0_10] : memref<1x32xf32, #tpu.memory_space<vmem>>, vector<1x32xf32>
    %10 = vector.broadcast %9 : vector<1x32xf32> to vector<8x32xf32>
    %11 = arith.addf %8, %10 : vector<8x32xf32>
    %c0_11 = arith.constant 0 : index
    %c0_12 = arith.constant 0 : index
    %12 = vector.load %arg4[%c0_11, %c0_12] : memref<32x32xf32, #tpu.memory_space<vmem>>, vector<32x32xf32>
    %cst_13 = arith.constant dense<0.000000e+00> : vector<8x32xf32>
    %13 = tpu.matmul %1, %12, %cst_13 {dimension_numbers = #tpu.dot_dimension_numbers<[1], [0], [0], [1], [0, 0, 1, 1], [], []>} : vector<8x32xf32>, vector<32x32xf32>, vector<8x32xf32> -> vector<8x32xf32>
    %c0_14 = arith.constant 0 : index
    %c0_15 = arith.constant 0 : index
    %14 = vector.load %arg7[%c0_14, %c0_15] : memref<1x32xf32, #tpu.memory_space<vmem>>, vector<1x32xf32>
    %15 = vector.broadcast %14 : vector<1x32xf32> to vector<8x32xf32>
    %16 = arith.addf %13, %15 : vector<8x32xf32>
    %17 = vector.shape_cast %6 : vector<8x32xf32> to vector<8x8x4xf32>
    %18 = tpu.transpose %17, [1, 0, 2] : vector<8x8x4xf32> -> vector<8x8x4xf32>
    %19 = vector.shape_cast %11 : vector<8x32xf32> to vector<8x8x4xf32>
    %20 = tpu.transpose %19, [1, 0, 2] : vector<8x8x4xf32> -> vector<8x8x4xf32>
    %21 = vector.shape_cast %16 : vector<8x32xf32> to vector<8x8x4xf32>
    %22 = tpu.transpose %21, [1, 0, 2] : vector<8x8x4xf32> -> vector<8x8x4xf32>
    %cst_16 = arith.constant dense<0.000000e+00> : vector<8x8x8xf32>
    %23 = tpu.matmul %18, %20, %cst_16 {dimension_numbers = #tpu.dot_dimension_numbers<[2], [2], [1], [1], [0, 0, 0, 1, 1, 1], [0], [0]>} : vector<8x8x4xf32>, vector<8x8x4xf32>, vector<8x8x8xf32> -> vector<8x8x8xf32>
    %cst_17 = arith.constant dense<0xFF800000> : vector<8x8xf32>
    %24 = vector.multi_reduction <maximumf>, %23, %cst_17 [2] : vector<8x8x8xf32> to vector<8x8xf32>
    %25 = vector.shape_cast %24 : vector<8x8xf32> to vector<8x8x1xf32>
    %26 = vector.broadcast %25 : vector<8x8x1xf32> to vector<8x8x8xf32>
    %27 = arith.subf %23, %26 : vector<8x8x8xf32>
    %28 = math.exp %27 : vector<8x8x8xf32>
    %cst_18 = arith.constant dense<0.000000e+00> : vector<8x8xf32>
    %29 = vector.multi_reduction <add>, %28, %cst_18 [2] : vector<8x8x8xf32> to vector<8x8xf32>
    %30 = vector.shape_cast %29 : vector<8x8xf32> to vector<8x8x1xf32>
    %31 = tpu.reciprocal %30 {approx = true} : vector<8x8x1xf32> -> vector<8x8x1xf32>
    %32 = vector.broadcast %31 : vector<8x8x1xf32> to vector<8x8x8xf32>
    %33 = arith.mulf %28, %32 : vector<8x8x8xf32>
    %cst_19 = arith.constant dense<0.000000e+00> : vector<8x8x4xf32>
    %34 = tpu.matmul %33, %22, %cst_19 {dimension_numbers = #tpu.dot_dimension_numbers<[2], [1], [1], [2], [0, 0, 0, 1, 1, 2], [0], [0]>} : vector<8x8x8xf32>, vector<8x8x4xf32>, vector<8x8x4xf32> -> vector<8x8x4xf32>
    %35 = tpu.transpose %34, [1, 0, 2] : vector<8x8x4xf32> -> vector<8x8x4xf32>
    %36 = vector.shape_cast %35 : vector<8x8x4xf32> to vector<8x32xf32>
    %c0_20 = arith.constant 0 : index
    %c0_21 = arith.constant 0 : index
    %37 = vector.load %arg8[%c0_20, %c0_21] : memref<32x32xf32, #tpu.memory_space<vmem>>, vector<32x32xf32>
    %cst_22 = arith.constant dense<0.000000e+00> : vector<8x32xf32>
    %38 = tpu.matmul %36, %37, %cst_22 {dimension_numbers = #tpu.dot_dimension_numbers<[1], [0], [0], [1], [0, 0, 1, 1], [], []>} : vector<8x32xf32>, vector<32x32xf32>, vector<8x32xf32> -> vector<8x32xf32>
    %c0_23 = arith.constant 0 : index
    %c0_24 = arith.constant 0 : index
    %39 = vector.load %arg9[%c0_23, %c0_24] : memref<1x32xf32, #tpu.memory_space<vmem>>, vector<1x32xf32>
    %40 = vector.broadcast %39 : vector<1x32xf32> to vector<8x32xf32>
    %41 = arith.addf %38, %40 : vector<8x32xf32>
    %c0_25 = arith.constant 0 : index
    %c0_26 = arith.constant 0 : index
    %c0_27 = arith.constant 0 : index
    %42 = vector.load %arg10[%c0_25, %c0_26, %c0_27] : memref<1x8x32xf32, #tpu.memory_space<vmem>>, vector<1x8x32xf32>
    %43 = vector.shape_cast %42 : vector<1x8x32xf32> to vector<8x32xf32>
    %44 = vector.shape_cast %41 : vector<8x32xf32> to vector<1x8x32xf32>
    tpu.vector_store %arg10[%c0_25, %c0_26, %c0_27], %44 {strides = array<i32>} : memref<1x8x32xf32, #tpu.memory_space<vmem>>, vector<1x8x32xf32>,
    return
  }
  func.func @transform_0(%arg0: i32) -> (i32, i32, i32) {
    %c0_i32 = arith.constant 0 : i32
    %c0_i32_0 = arith.constant 0 : i32
    %c0_i32_1 = arith.constant 0 : i32
    return %arg0, %c0_i32, %c0_i32_0 : i32, i32, i32
  }
  func.func @transform_1(%arg0: i32) -> (i32, i32) {
    %c0_i32 = arith.constant 0 : i32
    %c0_i32_0 = arith.constant 0 : i32
    %c0_i32_1 = arith.constant 0 : i32
    return %c0_i32, %c0_i32_0 : i32, i32
  }
  func.func @transform_2(%arg0: i32) -> (i32, i32) {
    %c0_i32 = arith.constant 0 : i32
    %c0_i32_0 = arith.constant 0 : i32
    %c0_i32_1 = arith.constant 0 : i32
    return %c0_i32, %c0_i32_0 : i32, i32
  }
  func.func @transform_3(%arg0: i32) -> (i32, i32) {
    %c0_i32 = arith.constant 0 : i32
    %c0_i32_0 = arith.constant 0 : i32
    %c0_i32_1 = arith.constant 0 : i32
    return %c0_i32, %c0_i32_0 : i32, i32
  }
  func.func @transform_4(%arg0: i32) -> (i32, i32) {
    %c0_i32 = arith.constant 0 : i32
    %c0_i32_0 = arith.constant 0 : i32
    %c0_i32_1 = arith.constant 0 : i32
    return %c0_i32, %c0_i32_0 : i32, i32
  }
  func.func @transform_5(%arg0: i32) -> (i32, i32) {
    %c0_i32 = arith.constant 0 : i32
    %c0_i32_0 = arith.constant 0 : i32
    %c0_i32_1 = arith.constant 0 : i32
    return %c0_i32, %c0_i32_0 : i32, i32
  }
  func.func @transform_6(%arg0: i32) -> (i32, i32) {
    %c0_i32 = arith.constant 0 : i32
    %c0_i32_0 = arith.constant 0 : i32
    %c0_i32_1 = arith.constant 0 : i32
    return %c0_i32, %c0_i32_0 : i32, i32
  }
  func.func @transform_7(%arg0: i32) -> (i32, i32) {
    %c0_i32 = arith.constant 0 : i32
    %c0_i32_0 = arith.constant 0 : i32
    %c0_i32_1 = arith.constant 0 : i32
    return %c0_i32, %c0_i32_0 : i32, i32
  }
  func.func @transform_8(%arg0: i32) -> (i32, i32) {
    %c0_i32 = arith.constant 0 : i32
    %c0_i32_0 = arith.constant 0 : i32
    %c0_i32_1 = arith.constant 0 : i32
    return %c0_i32, %c0_i32_0 : i32, i32
  }
  func.func @transform_9(%arg0: i32) -> (i32, i32, i32) {
    %c0_i32 = arith.constant 0 : i32
    %c0_i32_0 = arith.constant 0 : i32
    %c0_i32_1 = arith.constant 0 : i32
    return %arg0, %c0_i32, %c0_i32_0 : i32, i32, i32
  }
}

</mosaic_0001>

<bundles_post_ra>
// kernel: tpu_custom_call.1
= control target key start
LH: loop header
LB: loop body
LE: loop exit
PB: predicated region body
PF: predicated region fallthrough
CT: control target
= control target key end

     0   :  { %s4617_s0 = inlined_call_operand.hbm [shape: f32[2,8,32], index: 0, kind: input, shape index: {}]   ;;  %s4618_s1 = inlined_call_operand.hbm [shape: f32[32,32], index: 1, kind: input, shape index: {}]   ;;  %s4619_s2 = inlined_call_operand.hbm [shape: f32[32,32], index: 2, kind: input, shape index: {}]   ;;  %s4620_s3 = inlined_call_operand.hbm [shape: f32[32,32], index: 3, kind: input, shape index: {}]   ;;  %s4621_s4 = inlined_call_operand.vmem [shape: f32[1,32], index: 4, kind: input, shape index: {}]   ;;  %s4622_s5 = inlined_call_operand.vmem [shape: f32[1,32], index: 5, kind: input, shape index: {}]   ;;  %s4623_s6 = inlined_call_operand.vmem [shape: f32[1,32], index: 6, kind: input, shape index: {}]   ;;  %s4624_s7 = inlined_call_operand.hbm [shape: f32[32,32], index: 7, kind: input, shape index: {}]   ;;  %s4625_s8 = inlined_call_operand.vmem [shape: f32[1,32], index: 8, kind: input, shape index: {}]   ;;  %s4626_s9 = inlined_call_operand.hbm [shape: f32[2,8,32], index: 9, kind: output, shape index: {}]  }
   0x1   :  { %4631 = sst [smem:[#allocation16_spill]] %s4618_s1 }
   0x2   :  { %4632 = sst [smem:[#allocation17_spill]] %s4619_s2 }
   0x3   :  { %4633 = sst [smem:[#allocation18_spill]] %s4620_s3 }
   0x4   :  { %4634 = sst [smem:[#allocation19_spill]] %s4624_s7 }
   0x5   :  { %14 = vsyncpa [#allocation3], 0 }
   0x6   :  { %16 = vsyncpa [#allocation3 + $0x1], 0 }
   0x7   :  { %17 = vsyncpa [#allocation6], 0 }
   0x8   :  { %18 = vsyncpa [#allocation9], 0 }
   0x9   :  { %19 = vsyncpa [#allocation4], 0 }
   0xa   :  { %21 = vsyncpa [#allocation4 + $0x1], 0  ;;  %s4018_s30 = smov 0   ;;  %s4020_s10 = smov 0  }
   0xb   :  { %s4022_s11 = smov 0   ;;  %s4024_s12 = smov 0  }
   0xc LB: > { %s3942_s13 = smov [#allocation5]   ;;  %s4039_s15 = sadd.s32 4294967295, %s3940_s12   ;;  %s3940_s12 = sphi %s4024_s12, %s4658_s12   ;;  %s3936_s11 = sphi %s4022_s11, %s4657_s11   ;;  %s3932_s10 = sphi %s4020_s10, %s4656_s10   ;;  %s3928_s30 = sphi %s4018_s30, %s4655_s30  }
   0xd   : > { %s264_s14 = sshll.u32 %s3942_s13, 4  ;;  %p3338_p0 = scmp.ge.s32.totalorder %s3940_s12, 1  ;;  %s265_s14 = int_to_ptr.vmem [resolvable:$true] %s264_s14 }
   0xe   : > { %p4627_p1 = scmp.eq.s32.totalorder %s4039_s15, 0  ;;  %p252_p2 = scmp.lt.s32.totalorder %s3940_s12, 3 }
   0xf   : > { %s3943_s17 = smov [#allocation8]   ;;  %s3944_s20 = smov [#allocation7]  }
  0x10   : > { %p4044_p3 = pnand %p3338_p0, %p252_p2  ;;  %s290_s18 = sshll.u32 %s3943_s17, 4  ;;  %s4057_s18 = int_to_ptr.vmem [resolvable:$true] %s290_s18 }
  0x11   : > { %s277_s21 = sshll.u32 %s3944_s20, 4  ;;  %s3747_s22 = scalar_lea.vmem %s265_s14, 512  ;;  %s4059_s21 = int_to_ptr.vmem [resolvable:$true] %s277_s21 }
  0x12   : > { %s4635_s16 = scalar_select %p4044_p3, 1, 0 }
  0x13   : > { %p3617_p5 = pneg %p4044_p3  ;;  %p3748_p8 = scmp.ne.s32.totalorder %s265_s14, %s3747_s22 }
  0x14   : > { %p3755_p11 = scmp.lt.s32.totalorder %s265_s14, %s265_s14  ;;  %p3756_p12 = scmp.lt.s32.totalorder %s3747_s22, %s3747_s22 }
  0x15   : > { %p4053_p6 = pnand %p3617_p5, %p4627_p1 }
  0x16   : > { %p3757_p13 = por %p3756_p12, %p3755_p11 }
  0x17   : > { %p3738_p7 = pneg %p4053_p6 }
  0x19   : > { %p3750_p9 = pnand %p3748_p8, %p3738_p7 }
  0x1b   : > { %p3751_p10 = pneg %p3750_p9 }
  0x1d   : > { %p3758_p0 = pnand %p3757_p13, %p3751_p10 }
  0x1f   : > { %3761 = shalt.err (!%p3758_p0)
}
  0x20   : > { %s3945_s23 = smov 128   ;;  %s3946_s24 = smov 8  }
  0x21   : > { %s4637_s1 = sld [smem:[#allocation16_spill]]  ;;  %s3773_s27 = scalar_lea.vmem %s4057_s18, 512 }
  0x22   : > { %p3774_p2 = scmp.ne.s32.totalorder %s4057_s18, %s3773_s27  ;;  %p3781_p9 = scmp.lt.s32.totalorder %s4057_s18, %s4057_s18 }
  0x23   : > { %p3782_p10 = scmp.lt.s32.totalorder %s3773_s27, %s3773_s27 }
  0x24   : > { %p3776_p5 = pnand %p3774_p2, %p3738_p7 }
  0x25   : > { %p3783_p11 = por %p3782_p10, %p3781_p9 }
  0x26   : > { %p3777_p8 = pneg %p3776_p5 }
  0x27   : > { %3620 = dma.hbm_to_vmem [thread:$0]  (!%p4053_p6), %s4637_s1, 512, %s265_s14, [#allocation6], %s3945_s23, %s3945_s23, %s3946_s24  }
  0x28   : > { %p3784_p12 = pnand %p3783_p11, %p3777_p8 }
  0x2a   : > { %3787 = shalt.err (!%p3784_p12)
}
  0x2b   : > { %s4638_s3 = sld [smem:[#allocation18_spill]]  ;;  %s3799_s13 = scalar_lea.vmem %s4059_s21, 512 }
  0x2c   : > { %p3800_p13 = scmp.ne.s32.totalorder %s4059_s21, %s3799_s13  ;;  %p3807_p5 = scmp.lt.s32.totalorder %s4059_s21, %s4059_s21 }
  0x2d   : > { %p3808_p8 = scmp.lt.s32.totalorder %s3799_s13, %s3799_s13 }
  0x2e   : > { %p3802_p0 = pnand %p3800_p13, %p3738_p7 }
  0x2f   : > { %p3809_p9 = por %p3808_p8, %p3807_p5 }
  0x30   : > { %p3803_p2 = pneg %p3802_p0 }
  0x31   : > { %3626 = dma.hbm_to_vmem [thread:$0]  (!%p4053_p6), %s4638_s3, 512, %s4057_s18, [#allocation9], %s3945_s23, %s3945_s23, %s3946_s24  }
  0x32   : > { %p3810_p10 = pnand %p3809_p9, %p3803_p2 }
  0x34   : > { %3813 = shalt.err (!%p3810_p10)
}
  0x35   : > { %s4639_s2 = sld [smem:[#allocation17_spill]]  ;;  %s3947_s18 = smov [#allocation10]  }
  0x36   : > { %s312_s20 = sshll.u32 %s3947_s18, 4  ;;  %s313_s20 = int_to_ptr.vmem [resolvable:$true] %s312_s20 }
  0x37   : > { %s3825_s22 = scalar_lea.vmem %s313_s20, 512  ;;  %p3833_p0 = scmp.lt.s32.totalorder %s313_s20, %s313_s20 }
  0x38   : > { %p3826_p11 = scmp.ne.s32.totalorder %s313_s20, %s3825_s22  ;;  %p3834_p2 = scmp.lt.s32.totalorder %s3825_s22, %s3825_s22 }
  0x3a   : > { %p3828_p12 = pnand %p3826_p11, %p3738_p7  ;;  %p3835_p5 = por %p3834_p2, %p3833_p0 }
  0x3b   : > { %3623 = dma.hbm_to_vmem [thread:$0]  (!%p4053_p6), %s4639_s2, 512, %s4059_s21, [#allocation6], %s3945_s23, %s3945_s23, %s3946_s24  }
  0x3c   : > { %p3829_p13 = pneg %p3828_p12 }
  0x3e   : > { %p3836_p8 = pnand %p3835_p5, %p3829_p13 }
  0x40   : > { %3839 = shalt.err (!%p3836_p8)
}
  0x41   : > { %s4640_s7 = sld [smem:[#allocation19_spill]]  ;;  %s3337_s19 = sadd.s32 4294967294, %s3940_s12  }
  0x42   : > { %s4119_s26 = sadd.s32 1, %s3940_s12   ;;  %s34_s28 = sadd.s32 1, %s3936_s11 }
  0x43   : > { %s31_s27 = ssub.s32 %s3940_s12, %s4119_s26  ;;  %p41_p9 = scmp.ne.s32.totalorder %s3936_s11, %s3932_s10 }
  0x44   : > { %p32_p7 = scmp.eq.s32.totalorder %s31_s27, 0  ;;  %p42_p10 = scmp.eq.s32.totalorder %s3940_s12, 0 }
  0x45   : > { %p47_p11 = scmp.ne.s32.totalorder %s3932_s10, %s3928_s30  ;;  %p239_p13 = scmp.eq.s32.totalorder %s4039_s15, 1 }
  0x46   : > { %s4130_s29 = scalar_select %p32_p7, %s3936_s11, %s34_s28  }
  0x47   : > { %3629 = dma.hbm_to_vmem [thread:$0]  (!%p4053_p6), %s4640_s7, 512, %s313_s20, [#allocation9], %s3945_s23, %s3945_s23, %s3946_s24  }
  0x48   : > { %p4132_p12 = por %p42_p10, %p41_p9  ;;  %p4138_p6 = por %p4627_p1, %p47_p11 }
  0x49   : > { %p245_p0 = scmp.eq.s32.totalorder %s3337_s19, 1  ;;  %p3642_p2 = scmp.lt.s32.totalorder %s3940_s12, 2 }
  0x4a   : > { %s4642_s23 = scalar_select %p4138_p6, 1, 0 }
  0x4b   : > { %s329_s24 = sand.u32 1, %s3936_s11   ;;  %p4145_p5 = por %p239_p13, %p41_p9 }
  0x4c   : > { %p4149_p8 = por %p245_p0, %p47_p11  ;;  %s3344_s18 = sshll.u32 %s329_s24, 3 }
  0x4d   : > { %s4643_s14 = scalar_select %p4145_p5, 1, 0 }
  0x4e   : > { %s4644_s17 = scalar_select %p4149_p8, 1, 0 }
  0x4f   : > { %s3345_s20 = sshll.u32 %s3940_s12, 7  ;;  %s333_s19 = scalar_lea.vmem [#allocation2], %s3344_s18 }
  0x50   : > { %s4157_s25 = scalar_lea.hbm %s4617_s0, %s3345_s20  ;;  %s340_s27 = sshll.u32 %s333_s19, 4  ;;  %s341_s27 = int_to_ptr.vmem [resolvable:$true] %s340_s27 }
  0x51   : > { %p4161_p7 = pnand %p3642_p2, %p4132_p12  ;;  %s330_s1 = scalar_lea.sflag [#allocation3], %s329_s24 }
  0x52   : > { %s3840_s2 = scalar_lea.hbm %s4157_s25, 128  ;;  %s3845_s21 = scalar_lea.hbm %s4617_s0, 256 }
  0x53   : > { %p3841_p9 = scmp.ne.s32.totalorder %s4157_s25, %s3840_s2  ;;  %p3842_p10 = pneg %p4161_p7 }
  0x54   : > { %p3846_p0 = scmp.lt.s32.totalorder %s4157_s25, %s4617_s0  ;;  %p3847_p12 = scmp.lt.s32.totalorder %s3845_s21, %s3840_s2 }
  0x55   : > { %p3843_p11 = pnand %p3842_p10, %p3841_p9 }
  0x56   : > { %p3848_p2 = por %p3847_p12, %p3846_p0 }
  0x57   : > { %p3844_p13 = pneg %p3843_p11 }
  0x59   : > { %p3849_p4 = pnand %p3848_p2, %p3844_p13 }
  0x5b   : > { %3852 = shalt.err (!%p3849_p4)
}
  0x5c   : > { %s3853_s13 = scalar_lea.vmem %s341_s27, 128  ;;  %s3948_s24 = smov [#allocation2]  }
  0x5d   : > { %p3854_p1 = scmp.ne.s32.totalorder %s341_s27, %s3853_s13  ;;  %s3858_s3 = sshll.u32 %s3948_s24, 4  ;;  %s3859_s3 = int_to_ptr.vmem [resolvable:$false] %s3858_s3 }
  0x5e   : > { %s3860_s7 = scalar_lea.vmem %s3859_s3, 256  ;;  %p3861_p9 = scmp.lt.s32.totalorder %s341_s27, %s3859_s3 }
  0x5f   : > { %p3856_p8 = pnand %p3854_p1, %p3842_p10  ;;  %p3862_p11 = scmp.lt.s32.totalorder %s3860_s7, %s3853_s13 }
  0x61   : > { %p3857_p5 = pneg %p3856_p8  ;;  %p3863_p6 = por %p3862_p11, %p3861_p9 }
  0x63   : > { %p3864_p3 = pnand %p3863_p6, %p3857_p5 }
  0x65   : > { %3867 = shalt.err (!%p3864_p3)
}
  0x66   : > { %3633 = dma.hbm_to_vmem [thread:$0]  (!%p4161_p7), %s4157_s25, 128, %s341_s27, %s330_s1  }
  0x67   : > { %p4646_p13 = scmp.ne.s32.totalorder %s4635_s16, 0 }
  0x68   : > { %s4182_s2 = sand.u32 (!%p4646_p13), 1, %s3932_s10   ;;  %p4647_p1 = scmp.ne.s32.totalorder (!%p4646_p13), %s4642_s23, 0 }
  0x69   : > { %349 = sbr.rel (%p4646_p13) target bundleno = 1598 (0x63e), region = 56  ;;  %s3347_s20 = sshll.u32 (!%p4646_p13), %s4182_s2, 3 }
  0x6a   : > { %s352_s3 = scalar_lea.sflag (!%p4646_p13), [#allocation3], %s4182_s2  ;;  %s4188_s7 = scalar_lea.vmem (!%p4646_p13), [#allocation2], %s3347_s20 }
  0x6e   : > { %3911 = dma.done.wait (%p4647_p1), %s352_s3, 128  }
  0x6f   : > { %3913 = vsyncadd (%p4647_p1), %s352_s3, 4294967168  ;;  %p4648_p3 = scmp.eq.s32.totalorder %s4039_s15, 0 }
  0x71   : > { %3915 = dma.done.wait (%p4648_p3), [#allocation6], 1024   ;;  %p4649_p4 = pmov %p4648_p3 }
  0x72   : > { %p4650_p6 = pmov %p4648_p3 }
  0x73   : > { %3917 = vsyncadd (%p4649_p4), [#allocation6], 4294966272 }
  0x74   : > { %3919 = dma.done.wait (%p4650_p6), [#allocation9], 1024   ;;  %p4651_p5 = pmov %p4648_p3 }
  0x75   : > { %v3949_v0 = vmov 0.0   ;;  %vm3950_vm0 = vmmov 0   ;;  %v495_v1 = vld [vmem:[#allocation7 + $0x18] sm:$0xff]  ;;  %v494_v3 = vld [vmem:[#allocation7 + $0x10] sm:$0xff]  ;;  %v493_v5 = vld [vmem:[#allocation7 + $0x8] sm:$0xff]  ;;  %vm418_vm1 = vcmask 261120   ;;  %v681_v28 = vlaneseq }
  0x76   : > { %3921 = vsyncadd (%p4651_p5), [#allocation9], 4294966272  ;;  %3484 = vmatprep.subr.mxu1 %v3949_v0  ;;  %3473 = vmatprep.subr.mxu0 %v3949_v0  ;;  %v410_v2 = vld [vmem:[#allocation5 + $0x18] sm:$0xff]  ;;  %v409_v4 = vld [vmem:[#allocation5 + $0x10] sm:$0xff]  ;;  %s3951_s27 = smov 116   ;;  %s3952_s28 = smov 124  }
  0x77   : > { %3492 = vmatprep.mubr.msk.f32.mxu1 %vm3950_vm0, %v3949_v0  ;;  %3481 = vmatprep.mubr.msk.f32.mxu0 %vm3950_vm0, %v3949_v0  ;;  %v408_v6 = vld [vmem:[#allocation5 + $0x8] sm:$0xff]  ;;  %v492_v7 = vld [vmem:[#allocation7] sm:$0xff]  ;;  %v406_v9 = vld [vmem:[%s4188_s7] sm:$0xff]  ;;  %s3953_s22 = smov 120   ;;  %s3954_s21 = smov 112   ;;  %v682_v32 = vshrl.u32 %v681_v28, 7 }
  0x78   : > { %3485 = vmatpush3.msra.mxu1 %v495_v1  ;;  %3474 = vmatpush3.msra.mxu0 %v410_v2  ;;  %v407_v8 = vld [vmem:[#allocation5] sm:$0xff]  ;;  %v576_v10 = vld [vmem:[#allocation8 + $0x18] sm:$0xff]  ;;  %v575_v11 = vld [vmem:[#allocation8 + $0x10] sm:$0xff]  ;;  %s3955_s18 = smov 108   ;;  %s3956_s19 = smov 104   ;;  %vm1536_vm2 = vcmask 31744  }
  0x79   : > { %3486 = vmatprep.subr.mxu1 %v3949_v0  ;;  %3475 = vmatprep.subr.mxu0 %v3949_v0  ;;  %v574_v12 = vld [vmem:[#allocation8 + $0x8] sm:$0xff]  ;;  %v573_v13 = vld [vmem:[#allocation8] sm:$0xff]  ;;  %v3355_v14 = vld [vmem:[%s4622_s5] ss:$0 sm:$0xff]  ;;  %s3957_s13 = smov 100   ;;  %vm2145_vm3 = vcmask 64512  }
  0x7a   : > { %3487 = vmatpush3.msra.mxu1 %v494_v3  ;;  %3476 = vmatpush3.msra.mxu0 %v409_v4  ;;  %v3353_v16 = vld [vmem:[%s4621_s4] ss:$0 sm:$0xff]  ;;  %v3958_v26 = vmov 1983009808   ;;  %v3959_v29 = vmov 1934713408  }
  0x7b   : > { %3488 = vmatprep.subr.mxu1 %v3949_v0  ;;  %3477 = vmatprep.subr.mxu0 %v3949_v0  ;;  %v3357_v22 = vld [vmem:[%s4623_s6] ss:$0 sm:$0xff]  ;;  %v679_v27 = vunpack.c.l.s4 %v3958_v26  ;;  %v743_v30 = vunpack.c.l.s4 %v3959_v29  ;;  %s3960_s7 = smov 8   ;;  %s3961_s1 = smov 4   ;;  %vm3120_vm4 = vcmask 97280   ;;  %vm3122_vm5 = vcmask 130048  }
  0x7c   : > { %3489 = vmatpush3.msra.mxu1 %v493_v5  ;;  %3478 = vmatpush3.msra.mxu0 %v408_v6  ;;  %s3962_s16 = smov 12   ;;  %s3963_s23 = smov 20   ;;  %vm3124_vm6 = vcmask 162816   ;;  %vm3126_vm7 = vcmask 195584   ;;  %vm3128_vm8 = vcmask 228352  }
  0x7d   : > { %3490 = vmatprep.subr.mxu1 %v3949_v0  ;;  %3479 = vmatprep.subr.mxu0 %v3949_v0  ;;  %v680_v31 = vunpack.c.0.s8 %v679_v27  ;;  %v744_v35 = vunpack.c.0.s8 %v743_v30  ;;  %s3964_s25 = smov 16   ;;  %p4652_p7 = scmp.ne.s32.totalorder %s4643_s14, 0 }
  0x7e   : > { %3491 = vmatpush3.msra.mxu1 %v492_v7  ;;  %3480 = vmatpush3.msra.mxu0 %v407_v8 }
  0x7f   : > { %3493 = vmatmul.mubr.msk.f32.vlgmr.msra.gmra.mxu1 %vm418_vm1, %v406_v9  ;;  %3482 = vmatmul.mubr.msk.f32.vlgmr.msra.gmra.mxu0 %vm418_vm1, %v406_v9  ;;  %v4262_v36 = vsub.s32 %v680_v31, %v682_v32  ;;  %v4264_v43 = vsub.s32 %v744_v35, %v682_v32 }
  0x80   : > { %3495 = vmatprep.subr.mxu0 %v3949_v0  ;;  %3503 = vmatprep.mubr.msk.f32.mxu0 %vm3950_vm0, %v3949_v0 }
  0x81   : > { %3506 = vmatprep.subr.mxu1 %v3949_v0  ;;  %3508 = vmatprep.mubr.msk.f32.mxu1 %vm3950_vm0, %v3949_v0 }
  0x82   : > { %3496 = vmatpush3.msra.mxu0 %v576_v10 }
  0x83   : > { %3497 = vmatprep.subr.mxu0 %v3949_v0 }
  0x84   : > { %3498 = vmatpush3.msra.mxu0 %v575_v11 }
  0x85   : > { %3499 = vmatprep.subr.mxu0 %v3949_v0 }
  0x86   : > { %3500 = vmatpush3.msra.mxu0 %v574_v12 }
  0x87   : > { %3501 = vmatprep.subr.mxu0 %v3949_v0 }
  0x88   : > { %3502 = vmatpush3.msra.mxu0 %v573_v13 }
  0x89   : > { %3504 = vmatmul.mubr.msk.f32.vlgmr.msra.gmra.mxu0 %vm418_vm1, %v406_v9  ;;  %3526 = vmatprep.subr.mxu0 %v3949_v0 }
  0x8a   : > { %3528 = vmatprep.mubr.msk.f32.mxu0 %vm3950_vm0, %v3949_v0 }
 0x13f   : > { %v569_v15 = vpop.f32.mrf.mxu1  ;;  %v488_v17 = vpop.f32.mrf.mxu0 }
 0x140   : > { %v570_v18 = vadd.f32 %v3355_v14, %v569_v15  ;;  %v4236_v21 = vadd.f32 %v3353_v16, %v488_v17 }
 0x141   : > { %v3494_v19 = vpop.f32.mrf.mxu1  ;;  %v3483_v20 = vpop.f32.mrf.mxu0 }
 0x142   : > { %955 = vrot.lane.b32.xlu1 %v570_v18, %s3951_s27  ;;  %949 = vrot.lane.b32.xlu0 %v570_v18, %s3952_s28 }
 0x146   : > { %952 = vrot.lane.b32.xlu0 %v570_v18, %s3953_s22  ;;  %655 = vrot.lane.b32.xlu1 %v4236_v21, %s3952_s28 }
 0x149   : > { %v650_v23 = vpop.f32.mrf.mxu0 }
 0x14a   : > { %658 = vrot.lane.b32.xlu0 %v4236_v21, %s3953_s22  ;;  %661 = vrot.lane.b32.xlu1 %v4236_v21, %s3951_s27  ;;  %v4258_v24 = vadd.f32 %v3357_v22, %v650_v23 }
 0x14b   : > { %v3505_v25 = vpop.f32.mrf.mxu0 }
 0x14e   : > { %958 = vrot.lane.b32.xlu0 %v570_v18, %s3954_s21  ;;  %961 = vrot.lane.b32.xlu1 %v570_v18, %s3955_s18 }
 0x152   : > { %964 = vrot.lane.b32.xlu0 %v570_v18, %s3956_s19  ;;  %967 = vrot.lane.b32.xlu1 %v570_v18, %s3957_s13 }
 0x156   : > { %664 = vrot.lane.b32.xlu0 %v4236_v21, %s3954_s21  ;;  %667 = vrot.lane.b32.xlu1 %v4236_v21, %s3955_s18 }
 0x15a   : > { %670 = vrot.lane.b32.xlu0 %v4236_v21, %s3956_s19  ;;  %673 = vrot.lane.b32.xlu1 %v4236_v21, %s3957_s13 }
 0x15e   : > { %1246 = vrot.lane.b32.xlu0 %v4258_v24, %s3953_s22  ;;  %1243 = vrot.lane.b32.xlu1 %v4258_v24, %s3952_s28  ;;  %s3966_s28 = smov 24  }
 0x1b4   : > { %v956_v33 = vpop.permute.xlu1 %955  ;;  %v950_v34 = vpop.permute.xlu0 %949 }
 0x1b5   : > { %v986_v37 = vcombine.low %v950_v34, %v956_v33  ;;  %v987_v38 = vcombine.high %v950_v34, %v956_v33 }
 0x1b7   : > { %v994_v44 = vrot.slane %v986_v37, %v4262_v36  ;;  %v1001_v45 = vrot.slane %v987_v38, %v4262_v36 }
 0x1b8   : > { %v953_v39 = vpop.permute.xlu0 %952  ;;  %v656_v40 = vpop.permute.xlu1 %655 }
 0x1b9   : > { %v970_v41 = vcombine.low %v570_v18, %v953_v39  ;;  %v971_v42 = vcombine.high %v570_v18, %v953_v39 }
 0x1bb   : > { %v978_v46 = vrot.slane %v970_v41, %v4262_v36  ;;  %v985_v47 = vrot.slane %v971_v42, %v4262_v36 }
 0x1bc   : > { %v659_v48 = vpop.permute.xlu0 %658  ;;  %v662_v49 = vpop.permute.xlu1 %661 }
 0x1bd   : > { %v1034_v50 = vcombine.low %v978_v46, %v994_v44  ;;  %v1035_v51 = vcombine.high %v978_v46, %v994_v44  ;;  %v1050_v52 = vcombine.low %v985_v47, %v1001_v45  ;;  %v1051_v53 = vcombine.high %v985_v47, %v1001_v45 }
 0x1be   : > { %v676_v54 = vcombine.low %v4236_v21, %v659_v48  ;;  %v677_v55 = vcombine.high %v4236_v21, %v659_v48  ;;  %v692_v56 = vcombine.low %v656_v40, %v662_v49  ;;  %v693_v57 = vcombine.high %v656_v40, %v662_v49 }
 0x1bf   : > { %v1042_v58 = vrot.slane %v1034_v50, %v4264_v43  ;;  %v1049_v59 = vrot.slane %v1035_v51, %v4264_v43  ;;  %v1058_v60 = vrot.slane %v1050_v52, %v4264_v43  ;;  %v1065_v61 = vrot.slane %v1051_v53, %v4264_v43 }
 0x1c0   : > { %v684_v62 = vrot.slane %v676_v54, %v4262_v36  ;;  %v691_v63 = vrot.slane %v677_v55, %v4262_v36  ;;  %v700_v1 = vrot.slane %v692_v56, %v4262_v36  ;;  %v707_v2 = vrot.slane %v693_v57, %v4262_v36  ;;  %v959_v3 = vpop.permute.xlu0 %958  ;;  %v962_v4 = vpop.permute.xlu1 %961 }
 0x1c1   : > { %v3367_v5 = vcombine.low %v1042_v58, %v1049_v59  ;;  %v3369_v6 = vcombine.high %v1042_v58, %v1049_v59  ;;  %v3371_v7 = vcombine.low %v1058_v60, %v1065_v61  ;;  %v3373_v8 = vcombine.high %v1058_v60, %v1065_v61 }
 0x1c2   : > { %v740_v9 = vcombine.low %v684_v62, %v700_v1  ;;  %v741_v10 = vcombine.high %v684_v62, %v700_v1  ;;  %v756_v11 = vcombine.low %v691_v63, %v707_v2  ;;  %v757_v12 = vcombine.high %v691_v63, %v707_v2 }
 0x1c3   : > { %v4281_v13 = vrot.slane %v3367_v5, %v4262_v36  ;;  %v4284_v14 = vrot.slane %v3369_v6, %v4262_v36  ;;  %v4287_v15 = vrot.slane %v3371_v7, %v4262_v36  ;;  %v4290_v16 = vrot.slane %v3373_v8, %v4262_v36 }
 0x1c4   : > { %v748_v17 = vrot.slane %v740_v9, %v4264_v43  ;;  %v755_v18 = vrot.slane %v741_v10, %v4264_v43  ;;  %v764_v19 = vrot.slane %v756_v11, %v4264_v43  ;;  %v771_v20 = vrot.slane %v757_v12, %v4264_v43  ;;  %v965_v21 = vpop.permute.xlu0 %964  ;;  %v968_v22 = vpop.permute.xlu1 %967 }
 0x1c5   : > { %v1170_v23 = vcombine.low %v4281_v13, %v4284_v14  ;;  %v1202_v25 = vcombine.low %v4287_v15, %v4290_v16  ;;  %v1002_v30 = vcombine.low %v959_v3, %v965_v21  ;;  %v1003_v31 = vcombine.high %v959_v3, %v965_v21 }
 0x1c6   : > { %v3359_v26 = vcombine.low %v748_v17, %v755_v18  ;;  %v3361_v27 = vcombine.high %v748_v17, %v755_v18  ;;  %v3363_v28 = vcombine.low %v764_v19, %v771_v20  ;;  %v3365_v29 = vcombine.high %v764_v19, %v771_v20 }
 0x1c7   : > { %v1018_v32 = vcombine.low %v962_v4, %v968_v22  ;;  %v1019_v33 = vcombine.high %v962_v4, %v968_v22  ;;  %v1010_v41 = vrot.slane %v1002_v30, %v4262_v36  ;;  %v1017_v42 = vrot.slane %v1003_v31, %v4262_v36 }
 0x1c8   : > { %v4301_v34 = vrot.slane %v3359_v26, %v4262_v36  ;;  %v4304_v35 = vrot.slane %v3361_v27, %v4262_v36  ;;  %v4307_v37 = vrot.slane %v3363_v28, %v4262_v36  ;;  %v4310_v38 = vrot.slane %v3365_v29, %v4262_v36  ;;  %v665_v39 = vpop.permute.xlu0 %664  ;;  %v668_v40 = vpop.permute.xlu1 %667 }
 0x1c9   : > { %v1026_v44 = vrot.slane %v1018_v32, %v4262_v36  ;;  %v1033_v45 = vrot.slane %v1019_v33, %v4262_v36  ;;  %v1171_v46 = vcombine.high %v4281_v13, %v4284_v14  ;;  %v1203_v47 = vcombine.high %v4287_v15, %v4290_v16 }
 0x1ca   : > { %v876_v48 = vcombine.low %v4301_v34, %v4304_v35  ;;  %v908_v49 = vcombine.low %v4307_v37, %v4310_v38  ;;  %v1178_v54 = vrot.slane %v1170_v23, %v4264_v43  ;;  %v1210_v55 = vrot.slane %v1202_v25, %v4264_v43 }
 0x1cb   : > { %v1066_v50 = vcombine.low %v1010_v41, %v1026_v44  ;;  %v1067_v51 = vcombine.high %v1010_v41, %v1026_v44  ;;  %v1082_v52 = vcombine.low %v1017_v42, %v1033_v45  ;;  %v1083_v53 = vcombine.high %v1017_v42, %v1033_v45 }
 0x1cc   : > { %v671_v56 = vpop.permute.xlu0 %670  ;;  %v674_v57 = vpop.permute.xlu1 %673  ;;  %v4327_v58 = vrot.slane %v876_v48, %v4264_v43  ;;  %v916_v59 = vrot.slane %v908_v49, %v4264_v43  ;;  %v1234_v1 = vcombine.low %v1178_v54, %v1210_v55  ;;  %v877_v21 = vcombine.high %v4301_v34, %v4304_v35 }
 0x1cd   : > { %v1074_v60 = vrot.slane %v1066_v50, %v4264_v43  ;;  %v1081_v61 = vrot.slane %v1067_v51, %v4264_v43  ;;  %v1090_v62 = vrot.slane %v1082_v52, %v4264_v43  ;;  %v1097_v63 = vrot.slane %v1083_v53, %v4264_v43 }
 0x1ce   : > { %v708_v2 = vcombine.low %v665_v39, %v671_v56  ;;  %v709_v3 = vcombine.high %v665_v39, %v671_v56  ;;  %v724_v4 = vcombine.low %v668_v40, %v674_v57  ;;  %3507 = vmatpush3.xpose.msk.msra.mxu1 %vm1536_vm2, %v1234_v1  ;;  %v725_v11 = vcombine.high %v668_v40, %v674_v57 }
 0x1cf   : > { %v3368_v5 = vcombine.low %v1074_v60, %v1081_v61  ;;  %v3370_v6 = vcombine.high %v1074_v60, %v1081_v61  ;;  %v3372_v7 = vcombine.low %v1090_v62, %v1097_v63  ;;  %v3374_v8 = vcombine.high %v1090_v62, %v1097_v63  ;;  %3511 = vmatprep.subr.mxu1 %v3949_v0 }
 0x1d0   : > { %v716_v9 = vrot.slane %v708_v2, %v4262_v36  ;;  %v723_v10 = vrot.slane %v709_v3, %v4262_v36  ;;  %v732_v12 = vrot.slane %v724_v4, %v4262_v36  ;;  %v739_v17 = vrot.slane %v725_v11, %v4262_v36 }
 0x1d1   : > { %v1121_v13 = vrot.slane %v3368_v5, %v4262_v36  ;;  %v1137_v14 = vrot.slane %v3370_v6, %v4262_v36  ;;  %v1153_v15 = vrot.slane %v3372_v7, %v4262_v36  ;;  %v1169_v16 = vrot.slane %v3374_v8, %v4262_v36 }
 0x1d2   : > { %v772_v18 = vcombine.low %v716_v9, %v732_v12  ;;  %v773_v19 = vcombine.high %v716_v9, %v732_v12  ;;  %v940_v20 = vcombine.low %v4327_v58, %v916_v59  ;;  %v909_v22 = vcombine.high %v4307_v37, %v4310_v38 }
 0x1d3   : > { %v1186_v23 = vcombine.low %v1121_v13, %v1137_v14  ;;  %v788_v27 = vcombine.low %v723_v10, %v739_v17  ;;  %v789_v28 = vcombine.high %v723_v10, %v739_v17  ;;  %v1218_v29 = vcombine.low %v1153_v15, %v1169_v16 }
 0x1d4   : > { %v780_v25 = vrot.slane %v772_v18, %v4264_v43  ;;  %v787_v26 = vrot.slane %v773_v19, %v4264_v43  ;;  %3509 = vmatmul.mubr.msk.f32.vlgmr.msra.gmra.mxu1 %vm1536_vm2, %v940_v20  ;;  %v1235_v30 = vcombine.high %v1178_v54, %v1210_v55  ;;  %v1185_v31 = vrot.slane %v1171_v46, %v4264_v43 }
 0x1d5   : > { %3513 = vmatprep.mubr.msk.f32.mxu1 %vm3950_vm0, %v3949_v0  ;;  %v1217_v32 = vrot.slane %v1203_v47, %v4264_v43  ;;  %v796_v33 = vrot.slane %v788_v27, %v4264_v43  ;;  %v803_v34 = vrot.slane %v789_v28, %v4264_v43  ;;  %v941_v38 = vcombine.high %v4327_v58, %v916_v59 }
 0x1d6   : > { %v3360_v35 = vcombine.low %v780_v25, %v787_v26  ;;  %v3362_v37 = vcombine.high %v780_v25, %v787_v26  ;;  %3512 = vmatpush3.xpose.msk.msra.mxu1 %vm1536_vm2, %v1235_v30  ;;  %v891_v39 = vrot.slane %v877_v21, %v4264_v43  ;;  %v923_v40 = vrot.slane %v909_v22, %v4264_v43 }
 0x1d7   : > { %v3364_v44 = vcombine.low %v796_v33, %v803_v34  ;;  %v3366_v45 = vcombine.high %v796_v33, %v803_v34  ;;  %3516 = vmatprep.subr.mxu1 %v3949_v0  ;;  %v1187_v46 = vcombine.high %v1121_v13, %v1137_v14  ;;  %v1236_v47 = vcombine.low %v1185_v31, %v1217_v32 }
 0x1d8   : > { %v827_v41 = vrot.slane %v3360_v35, %v4262_v36  ;;  %v843_v42 = vrot.slane %v3362_v37, %v4262_v36  ;;  %v1194_v48 = vrot.slane %v1186_v23, %v4264_v43  ;;  %v1226_v49 = vrot.slane %v1218_v29, %v4264_v43  ;;  %v1247_v37 = vpop.permute.xlu0 %1246 }
 0x1d9   : > { %v1219_v50 = vcombine.high %v1153_v15, %v1169_v16  ;;  %v859_v51 = vrot.slane %v3364_v44, %v4262_v36  ;;  %v875_v52 = vrot.slane %v3366_v45, %v4262_v36  ;;  %3514 = vmatmul.mubr.msk.f32.vlgmr.msra.gmra.mxu1 %vm1536_vm2, %v941_v38  ;;  %v942_v56 = vcombine.low %v891_v39, %v923_v40 }
 0x1da   : > { %v892_v53 = vcombine.low %v827_v41, %v843_v42  ;;  %3517 = vmatpush3.xpose.msk.msra.mxu1 %vm1536_vm2, %v1236_v47  ;;  %3518 = vmatprep.mubr.msk.f32.mxu1 %vm3950_vm0, %v3949_v0  ;;  %v1238_v54 = vcombine.low %v1194_v48, %v1226_v49  ;;  %v893_v58 = vcombine.high %v827_v41, %v843_v42  ;;  %v1244_v41 = vpop.permute.xlu1 %1243 }
 0x1db   : > { %v924_v55 = vcombine.low %v859_v51, %v875_v52  ;;  %3521 = vmatprep.subr.mxu1 %v3949_v0  ;;  %v1237_v59 = vcombine.high %v1185_v31, %v1217_v32  ;;  %v1201_v60 = vrot.slane %v1187_v46, %v4264_v43  ;;  %v925_v61 = vcombine.high %v859_v51, %v875_v52 }
 0x1dc   : > { %v900_v57 = vrot.slane %v892_v53, %v4264_v43  ;;  %3527 = vmatpush3.xpose.msk.msra.mxu0 %vm1536_vm2, %v1238_v54  ;;  %v1233_v63 = vrot.slane %v1219_v50, %v4264_v43  ;;  %v943_v1 = vcombine.high %v891_v39, %v923_v40  ;;  %v1239_v3 = vcombine.high %v1194_v48, %v1226_v49 }
 0x1dd   : > { %3519 = vmatmul.mubr.msk.f32.vlgmr.msra.gmra.mxu1 %vm1536_vm2, %v942_v56  ;;  %3536 = vmatprep.subr.mxu0 %v3949_v0  ;;  %v932_v62 = vrot.slane %v924_v55, %v4264_v43  ;;  %v907_v4 = vrot.slane %v893_v58, %v4264_v43  ;;  %v939_v7 = vrot.slane %v925_v61, %v4264_v43 }
 0x1de   : > { %3522 = vmatpush3.xpose.msk.msra.mxu1 %vm1536_vm2, %v1237_v59  ;;  %3523 = vmatprep.mubr.msk.f32.mxu1 %vm3950_vm0, %v3949_v0  ;;  %v1240_v6 = vcombine.low %v1201_v60, %v1233_v63  ;;  %v1241_v8 = vcombine.high %v1201_v60, %v1233_v63  ;;  %v1264_v54 = vcombine.low %v4258_v24, %v1247_v37 }
 0x1df   : > { %3531 = vmatprep.subr.mxu1 %v3949_v0  ;;  %v944_v2 = vcombine.low %v900_v57, %v932_v62  ;;  %v945_v5 = vcombine.high %v900_v57, %v932_v62  ;;  %v946_v9 = vcombine.low %v907_v4, %v939_v7  ;;  %v947_v10 = vcombine.high %v907_v4, %v939_v7 }
 0x1e0   : > { %v1265_v55 = vcombine.high %v4258_v24, %v1247_v37  ;;  %v1272_v63 = vrot.slane %v1264_v54, %v4262_v36 }
 0x1e1   : > { %3524 = vmatmul.mubr.msk.f32.vlgmr.msra.gmra.mxu1 %vm1536_vm2, %v943_v1  ;;  %3529 = vmatmul.mubr.msk.f32.vlgmr.msra.gmra.mxu0 %vm1536_vm2, %v944_v2 }
 0x1e2   : > { %3532 = vmatpush3.xpose.msk.msra.mxu1 %vm1536_vm2, %v1239_v3  ;;  %3533 = vmatprep.mubr.msk.f32.mxu1 %vm3950_vm0, %v3949_v0  ;;  %v1279_v1 = vrot.slane %v1265_v55, %v4262_v36 }
 0x1e3   : > { %3541 = vmatprep.subr.mxu1 %v3949_v0  ;;  %3537 = vmatpush3.xpose.msk.msra.mxu0 %vm1536_vm2, %v1240_v6 }
 0x1e4   : > { %3538 = vmatprep.mubr.msk.f32.mxu0 %vm3950_vm0, %v3949_v0  ;;  %3546 = vmatprep.subr.mxu0 %v3949_v0 }
 0x1e5   : > { %3534 = vmatmul.mubr.msk.f32.vlgmr.msra.gmra.mxu1 %vm1536_vm2, %v945_v5 }
 0x1e6   : > { %3542 = vmatpush3.xpose.msk.msra.mxu1 %vm1536_vm2, %v1241_v8  ;;  %3543 = vmatprep.mubr.msk.f32.mxu1 %vm3950_vm0, %v3949_v0 }
 0x1e7   : > { %3539 = vmatmul.mubr.msk.f32.vlgmr.msra.gmra.mxu0 %vm1536_vm2, %v946_v9  ;;  %3551 = vmatprep.subr.mxu1 %v3949_v0 }
 0x1e8   : > { %3548 = vmatprep.mubr.msk.f32.mxu0 %vm3950_vm0, %v3949_v0 }
 0x1e9   : > { %3544 = vmatmul.mubr.msk.f32.vlgmr.msra.gmra.mxu1 %vm1536_vm2, %v947_v10 }
 0x1ea   : > { %3553 = vmatprep.mubr.msk.f32.mxu1 %vm3950_vm0, %v3949_v0 }
 0x294   : > { %v1609_v11 = vpop.f32.mrf.mxu1 }
 0x295   : > { %v2146_v12 = vsel %vm2145_vm3, %v1609_v11, -inf }
 0x296   : > { %v3510_v13 = vpop.f32.mrf.mxu1  ;;  %2147 = vmax.xlane.f32.xlu0 %v2146_v12 }
 0x299   : > { %v1685_v14 = vpop.f32.mrf.mxu1 }
 0x29a   : > { %v2149_v28 = vsel %vm2145_vm3, %v1685_v14, -inf }
 0x29b   : > { %v3515_v15 = vpop.f32.mrf.mxu1 }
 0x29d   : > { %v4409_v16 = vpop.f32.mrf.mxu1 }
 0x29e   : > { %v2152_v17 = vsel %vm2145_vm3, %v4409_v16, -inf }
 0x29f   : > { %v3520_v18 = vpop.f32.mrf.mxu1  ;;  %2153 = vmax.xlane.f32.xlu0 %v2152_v17 }
 0x2a1   : > { %v1837_v19 = vpop.f32.mrf.mxu1  ;;  %v1913_v20 = vpop.f32.mrf.mxu0 }
 0x2a2   : > { %v2155_v21 = vsel %vm2145_vm3, %v1837_v19, -inf  ;;  %v2158_v22 = vsel %vm2145_vm3, %v1913_v20, -inf }
 0x2a3   : > { %v3525_v23 = vpop.f32.mrf.mxu1  ;;  %2156 = vmax.xlane.f32.xlu0 %v2155_v21  ;;  %2159 = vmax.xlane.f32.xlu1 %v2158_v22  ;;  %v3530_v25 = vpop.f32.mrf.mxu0 }
 0x2a5   : > { %v1989_v26 = vpop.f32.mrf.mxu1 }
 0x2a6   : > { %v2161_v27 = vsel %vm2145_vm3, %v1989_v26, -inf }
 0x2a7   : > { %v3535_v29 = vpop.f32.mrf.mxu1  ;;  %2162 = vmax.xlane.f32.xlu0 %v2161_v27  ;;  %v4417_v30 = vpop.f32.mrf.mxu0  ;;  %2150 = vmax.xlane.f32.xlu1 %v2149_v28 }
 0x2a8   : > { %v2164_v35 = vsel %vm2145_vm3, %v4417_v30, -inf }
 0x2a9   : > { %v2141_v31 = vpop.f32.mrf.mxu1  ;;  %v3540_v32 = vpop.f32.mrf.mxu0 }
 0x2aa   : > { %v2167_v33 = vsel %vm2145_vm3, %v2141_v31, -inf }
 0x2ab   : > { %v3545_v34 = vpop.f32.mrf.mxu1  ;;  %2168 = vmax.xlane.f32.xlu0 %v2167_v33 }
 0x2b8   : > { %1249 = vrot.lane.b32.xlu1 %v4258_v24, %s3951_s27  ;;  %s3965_s27 = smov 28  }
 0x2c1   : > { %1252 = vrot.lane.b32.xlu0 %v4258_v24, %s3954_s21 }
 0x2dc   : > { %2165 = vmax.xlane.f32.xlu1 %v2164_v35 }
 0x2ed   : > { %1255 = vrot.lane.b32.xlu1 %v4258_v24, %s3955_s18  ;;  %s3418_s18 = sshll.u32 %s4039_s15, 7  ;;  %s3967_s15 = smov [#allocation11]  }
 0x31f   : > { %v2148_v38 = vpop.xlane.xlu0 %2147 }
 0x320   : > { %v2170_v39 = vsub.f32 %v1609_v11, %v2148_v38 }
 0x322   : > { %v2178_v40 = vmul.f32 1.442695, %v2170_v39 }
 0x324   : > { %3704 = vpow2.f32 %v2178_v40 }
 0x328   : > { %v4428_v42 = vpop.xlane.xlu0 %2153 }
 0x32c   : > { %v2157_v44 = vpop.xlane.xlu0 %2156  ;;  %v2160_v45 = vpop.xlane.xlu1 %2159 }
 0x32d   : > { %v2174_v46 = vsub.f32 %v1913_v20, %v2160_v45  ;;  %v2173_v49 = vsub.f32 %v1837_v19, %v2157_v44 }
 0x32f   : > { %v2186_v47 = vmul.f32 1.442695, %v2174_v46  ;;  %v2184_v57 = vmul.f32 1.442695, %v2173_v49 }
 0x330   : > { %v2163_v50 = vpop.xlane.xlu0 %2162  ;;  %v2151_v51 = vpop.xlane.xlu1 %2150 }
 0x331   : > { %v4430_v48 = vpop.eup %3704  ;;  %v2171_v52 = vsub.f32 %v1685_v14, %v2151_v51  ;;  %3706 = vpow2.f32 %v2186_v47  ;;  %v2175_v58 = vsub.f32 %v1989_v26, %v2163_v50 }
 0x332   : > { %v2194_v53 = vsel %vm2145_vm3, %v4430_v48, 0.0 }
 0x333   : > { %2195 = vadd.xlane.f32.xlu1 %v2194_v53  ;;  %v2180_v56 = vmul.f32 1.442695, %v2171_v52  ;;  %v2188_v4 = vmul.f32 1.442695, %v2175_v58  ;;  %v2172_v52 = vsub.f32 %v4409_v16, %v4428_v42 }
 0x334   : > { %v1250_v59 = vpop.permute.xlu1 %1249  ;;  %v2169_v60 = vpop.xlane.xlu0 %2168 }
 0x335   : > { %v1280_v61 = vcombine.low %v1244_v41, %v1250_v59  ;;  %v1281_v62 = vcombine.high %v1244_v41, %v1250_v59  ;;  %3708 = vpow2.f32 %v2180_v56  ;;  %v2177_v5 = vsub.f32 %v2141_v31, %v2169_v60 }
 0x336   : > { %3710 = vpow2.f32 %v2184_v57  ;;  %v2182_v55 = vmul.f32 1.442695, %v2172_v52 }
 0x337   : > { %v1288_v2 = vrot.slane %v1280_v61, %v4262_v36  ;;  %v1295_v3 = vrot.slane %v1281_v62, %v4262_v36  ;;  %3712 = vpow2.f32 %v2188_v4  ;;  %v2192_v13 = vmul.f32 1.442695, %v2177_v5 }
 0x338   : > { %v1253_v61 = vpop.permute.xlu0 %1252 }
 0x339   : > { %v1328_v6 = vcombine.low %v1272_v63, %v1288_v2  ;;  %v1329_v7 = vcombine.high %v1272_v63, %v1288_v2  ;;  %v1344_v8 = vcombine.low %v1279_v1, %v1295_v3  ;;  %v1345_v9 = vcombine.high %v1279_v1, %v1295_v3 }
 0x33a   : > { %3714 = vpow2.f32 %v2192_v13 }
 0x33b   : > { %v1336_v10 = vrot.slane %v1328_v6, %v4264_v43  ;;  %v1343_v11 = vrot.slane %v1329_v7, %v4264_v43  ;;  %v1352_v12 = vrot.slane %v1344_v8, %v4264_v43  ;;  %v1359_v14 = vrot.slane %v1345_v9, %v4264_v43 }
 0x33d   : > { %v3375_v15 = vcombine.low %v1336_v10, %v1343_v11  ;;  %v3377_v17 = vcombine.high %v1336_v10, %v1343_v11  ;;  %v3379_v18 = vcombine.low %v1352_v12, %v1359_v14  ;;  %v3381_v19 = vcombine.high %v1352_v12, %v1359_v14 }
 0x33e   : > { %v4444_v20 = vpop.eup %3706 }
 0x33f   : > { %v1408_v21 = vrot.slane %v3375_v15, %v4262_v36  ;;  %v1424_v22 = vrot.slane %v3377_v17, %v4262_v36  ;;  %v1440_v23 = vrot.slane %v3379_v18, %v4262_v36  ;;  %v1456_v25 = vrot.slane %v3381_v19, %v4262_v36 }
 0x340   : > { %v2206_v26 = vsel %vm2145_vm3, %v4444_v20, 0.0 }
 0x341   : > { %2207 = vadd.xlane.f32.xlu1 %v2206_v26  ;;  %v1464_v27 = vcombine.low %v1408_v21, %v1424_v22  ;;  %v1465_v28 = vcombine.high %v1408_v21, %v1424_v22  ;;  %v1496_v29 = vcombine.low %v1440_v23, %v1456_v25  ;;  %v1497_v31 = vcombine.high %v1440_v23, %v1456_v25 }
 0x342   : > { %v3709_v32 = vpop.eup %3708 }
 0x343   : > { %v1472_v33 = vrot.slane %v1464_v27, %v4264_v43  ;;  %v1479_v34 = vrot.slane %v1465_v28, %v4264_v43  ;;  %v2197_v35 = vsel %vm2145_vm3, %v3709_v32, 0.0  ;;  %v1504_v37 = vrot.slane %v1496_v29, %v4264_v43  ;;  %v3711_v39 = vpop.eup %3710 }
 0x344   : > { %v1511_v38 = vrot.slane %v1497_v31, %v4264_v43  ;;  %2198 = vadd.xlane.f32.xlu0 %v2197_v35  ;;  %v2203_v46 = vsel %vm2145_vm3, %v3711_v39, 0.0  ;;  %v4458_v47 = vpop.eup %3712 }
 0x345   : > { %v1528_v40 = vcombine.low %v1472_v33, %v1504_v37  ;;  %v1529_v41 = vcombine.high %v1472_v33, %v1504_v37  ;;  %v2209_v49 = vsel %vm2145_vm3, %v4458_v47, 0.0 }
 0x346   : > { %v1530_v44 = vcombine.low %v1479_v34, %v1511_v38  ;;  %v1531_v45 = vcombine.high %v1479_v34, %v1511_v38 }
 0x347   : > { %3547 = vmatpush3.msra.mxu0 %v1528_v40  ;;  %3552 = vmatpush3.msra.mxu1 %v1529_v41  ;;  %v4464_v50 = vpop.eup %3714 }
 0x348   : > { %2204 = vadd.xlane.f32.xlu0 %v2203_v46  ;;  %3556 = vmatprep.subr.mxu0 %v3949_v0  ;;  %v2215_v51 = vsel %vm2145_vm3, %v4464_v50, 0.0 }
 0x349   : > { %3561 = vmatprep.subr.mxu1 %v3949_v0 }
 0x34c   : > { %2210 = vadd.xlane.f32.xlu0 %v2209_v49 }
 0x350   : > { %2216 = vadd.xlane.f32.xlu0 %v2215_v51 }
 0x365   : > { %v2166_v53 = vpop.xlane.xlu1 %2165 }
 0x366   : > { %v2176_v54 = vsub.f32 %v4417_v30, %v2166_v53  ;;  %1261 = vrot.lane.b32.xlu0 %v4258_v24, %s3957_s13 }
 0x368   : > { %v2190_v56 = vmul.f32 1.442695, %v2176_v54 }
 0x369   : > { %v1256_v30 = vpop.permute.xlu1 %1255 }
 0x36a   : > { %3716 = vpow2.f32 %v2190_v56 }
 0x36b   : > { %3718 = vpow2.f32 %v2182_v55 }
 0x377   : > { %v4473_v57 = vpop.eup %3716 }
 0x378   : > { %v2212_v58 = vsel %vm2145_vm3, %v4473_v57, 0.0  ;;  %v4477_v59 = vpop.eup %3718 }
 0x379   : > { %2213 = vadd.xlane.f32.xlu1 %v2212_v58  ;;  %v2200_v16 = vsel %vm2145_vm3, %v4477_v59, 0.0 }
 0x37d   : > { %2201 = vadd.xlane.f32.xlu1 %v2200_v16 }
 0x38e   : > { %1258 = vrot.lane.b32.xlu1 %v4258_v24, %s3956_s19  ;;  %s405_s19 = scalar_lea.vmem [#allocation11], %s3347_s20  ;;  %s3872_s20 = sshll.u32 %s3967_s15, 4  ;;  %s3873_s20 = int_to_ptr.vmem [resolvable:$false] %s3872_s20 }
 0x38f   : > { %s3229_s13 = sshll.u32 %s405_s19, 4  ;;  %s3230_s13 = int_to_ptr.vmem [resolvable:$true] %s3229_s13 }
 0x390   : > { %p3875_p12 = scmp.lt.s32.totalorder %s3230_s13, %s3873_s20 }
 0x3bc   : > { %v2196_v42 = vpop.xlane.xlu1 %2195 }
 0x3bd   : > { %3720 = vrcp.f32 %v2196_v42 }
 0x3ca   : > { %v3721_v60 = vpop.eup %3720  ;;  %v2208_v5 = vpop.xlane.xlu1 %2207 }
 0x3cb   : > { %v2226_v62 = vmul.f32 %v3721_v60, %v4430_v48 }
 0x3cd   : > { %3549 = vmatmul.mubr.msk.f32.vlgmr.msra.gmra.mxu0 %vm2145_vm3, %v2226_v62  ;;  %v2199_v63 = vpop.xlane.xlu0 %2198 }
 0x3ce   : > { %3557 = vmatpush3.msra.mxu0 %v1530_v44  ;;  %3558 = vmatprep.mubr.msk.f32.mxu0 %vm3950_vm0, %v3949_v0  ;;  %3722 = vrcp.f32 %v2199_v63 }
 0x3cf   : > { %3566 = vmatprep.subr.mxu0 %v3949_v0 }
 0x3d1   : > { %v2205_v1 = vpop.xlane.xlu0 %2204 }
 0x3d2   : > { %3724 = vrcp.f32 %v2205_v1 }
 0x3d5   : > { %v2211_v4 = vpop.xlane.xlu0 %2210 }
 0x3d9   : > { %v2217_v6 = vpop.xlane.xlu0 %2216 }
 0x3db   : > { %v3723_v24 = vpop.eup %3722 }
 0x3dc   : > { %v2227_v2 = vmul.f32 %v3723_v24, %v3709_v32 }
 0x3dd   : > { %v1262_v8 = vpop.permute.xlu0 %1261 }
 0x3de   : > { %3554 = vmatmul.mubr.msk.f32.vlgmr.msra.gmra.mxu1 %vm2145_vm3, %v2227_v2  ;;  %v1312_v10 = vcombine.low %v1256_v30, %v1262_v8  ;;  %v1313_v11 = vcombine.high %v1256_v30, %v1262_v8 }
 0x3df   : > { %v3725_v3 = vpop.eup %3724  ;;  %3562 = vmatpush3.msra.mxu1 %v1531_v45  ;;  %3563 = vmatprep.mubr.msk.f32.mxu1 %vm3950_vm0, %v3949_v0 }
 0x3e0   : > { %v2229_v48 = vmul.f32 %v3725_v3, %v3711_v39  ;;  %3571 = vmatprep.subr.mxu1 %v3949_v0  ;;  %v1320_v15 = vrot.slane %v1312_v10, %v4262_v36  ;;  %v1327_v17 = vrot.slane %v1313_v11, %v4262_v36 }
 0x3e2   : > { %3564 = vmatmul.mubr.msk.f32.vlgmr.msra.gmra.mxu1 %vm2145_vm3, %v2229_v48 }
 0x3e3   : > { %3573 = vmatprep.mubr.msk.f32.mxu1 %vm3950_vm0, %v3949_v0 }
 0x402   : > { %v2214_v7 = vpop.xlane.xlu1 %2213 }
 0x406   : > { %v2202_v9 = vpop.xlane.xlu1 %2201 }
 0x407   : > { %3726 = vrcp.f32 %v2202_v9 }
 0x408   : > { %3728 = vrcp.f32 %v2208_v5 }
 0x409   : > { %3730 = vrcp.f32 %v2211_v4 }
 0x40a   : > { %v1259_v12 = vpop.permute.xlu1 %1258  ;;  %3732 = vrcp.f32 %v2217_v6 }
 0x40b   : > { %v1296_v13 = vcombine.low %v1253_v61, %v1259_v12  ;;  %v1297_v14 = vcombine.high %v1253_v61, %v1259_v12  ;;  %3734 = vrcp.f32 %v2214_v7 }
 0x40d   : > { %v1304_v18 = vrot.slane %v1296_v13, %v4262_v36  ;;  %v1311_v19 = vrot.slane %v1297_v14, %v4262_v36 }
 0x40f   : > { %v1360_v21 = vcombine.low %v1304_v18, %v1320_v15  ;;  %v1361_v22 = vcombine.high %v1304_v18, %v1320_v15  ;;  %v1376_v23 = vcombine.low %v1311_v19, %v1327_v17  ;;  %v1377_v25 = vcombine.high %v1311_v19, %v1327_v17 }
 0x411   : > { %v1368_v26 = vrot.slane %v1360_v21, %v4264_v43  ;;  %v1375_v27 = vrot.slane %v1361_v22, %v4264_v43  ;;  %v1384_v28 = vrot.slane %v1376_v23, %v4264_v43  ;;  %v1391_v29 = vrot.slane %v1377_v25, %v4264_v43 }
 0x413   : > { %v3376_v31 = vcombine.low %v1368_v26, %v1375_v27  ;;  %v3378_v32 = vcombine.high %v1368_v26, %v1375_v27  ;;  %v3380_v33 = vcombine.low %v1384_v28, %v1391_v29  ;;  %v3382_v34 = vcombine.high %v1384_v28, %v1391_v29 }
 0x414   : > { %v3727_v35 = vpop.eup %3726 }
 0x415   : > { %v1415_v37 = vrot.slane %v3376_v31, %v4262_v36  ;;  %v1431_v38 = vrot.slane %v3378_v32, %v4262_v36  ;;  %v1447_v39 = vrot.slane %v3380_v33, %v4262_v36  ;;  %v1463_v40 = vrot.slane %v3382_v34, %v4262_v36  ;;  %v3729_v51 = vpop.eup %3728 }
 0x416   : > { %v2228_v41 = vmul.f32 %v3727_v35, %v4477_v59  ;;  %v3731_v52 = vpop.eup %3730  ;;  %v2230_v60 = vmul.f32 %v3729_v51, %v4444_v20 }
 0x417   : > { %v1480_v44 = vcombine.low %v1415_v37, %v1431_v38  ;;  %v1512_v45 = vcombine.low %v1447_v39, %v1463_v40  ;;  %v1481_v46 = vcombine.high %v1415_v37, %v1431_v38  ;;  %v1513_v49 = vcombine.high %v1447_v39, %v1463_v40  ;;  %v3733_v58 = vpop.eup %3732  ;;  %v3133_v39 = vld [vmem:[#allocation10 + $0x18] sm:$0xff] }
 0x418   : > { %3559 = vmatmul.mubr.msk.f32.vlgmr.msra.gmra.mxu0 %vm2145_vm3, %v2228_v41  ;;  %v2231_v61 = vmul.f32 %v3731_v52, %v4458_v47  ;;  %v3735_v62 = vpop.eup %3734  ;;  %v2233_v1 = vmul.f32 %v3733_v58, %v4464_v50 }
 0x419   : > { %v1488_v53 = vrot.slane %v1480_v44, %v4264_v43  ;;  %v1520_v54 = vrot.slane %v1512_v45, %v4264_v43  ;;  %3568 = vmatprep.mubr.msk.f32.mxu0 %vm3950_vm0, %v3949_v0  ;;  %v1495_v55 = vrot.slane %v1481_v46, %v4264_v43  ;;  %v1527_v56 = vrot.slane %v1513_v49, %v4264_v43 }
 0x41a   : > { %v2232_v63 = vmul.f32 %v3735_v62, %v4473_v57 }
 0x41b   : > { %v1532_v59 = vcombine.low %v1488_v53, %v1520_v54  ;;  %v1533_v16 = vcombine.high %v1488_v53, %v1520_v54  ;;  %v1534_v30 = vcombine.low %v1495_v55, %v1527_v56  ;;  %v1535_v42 = vcombine.high %v1495_v55, %v1527_v56 }
 0x41d   : > { %3567 = vmatpush3.msra.mxu0 %v1532_v59  ;;  %3572 = vmatpush3.msra.mxu1 %v1533_v16 }
 0x41e   : > { %3569 = vmatmul.mubr.msk.f32.vlgmr.msra.gmra.mxu0 %vm2145_vm3, %v2230_v60  ;;  %3574 = vmatmul.mubr.msk.f32.vlgmr.msra.gmra.mxu1 %vm2145_vm3, %v2231_v61 }
 0x41f   : > { %3576 = vmatprep.subr.mxu0 %v3949_v0  ;;  %3581 = vmatprep.subr.mxu1 %v3949_v0 }
 0x420   : > { %3577 = vmatpush3.msra.mxu0 %v1534_v30  ;;  %3582 = vmatpush3.msra.mxu1 %v1535_v42 }
 0x421   : > { %3578 = vmatprep.mubr.msk.f32.mxu0 %vm3950_vm0, %v3949_v0  ;;  %3583 = vmatprep.mubr.msk.f32.mxu1 %vm3950_vm0, %v3949_v0 }
 0x422   : > { %3579 = vmatmul.mubr.msk.f32.vlgmr.msra.gmra.mxu0 %vm2145_vm3, %v2232_v63  ;;  %3584 = vmatmul.mubr.msk.f32.vlgmr.msra.gmra.mxu1 %vm2145_vm3, %v2233_v1 }
 0x423   : > { %3586 = vmatprep.subr.mxu0 %v3949_v0  ;;  %3594 = vmatprep.mubr.msk.f32.mxu0 %vm3950_vm0, %v3949_v0 }
 0x424   : > { %3587 = vmatpush3.msra.mxu0 %v3133_v39 }
 0x425   : > { %3588 = vmatprep.subr.mxu0 %v3949_v0 }
 0x48d   : > { %v2303_v20 = vpop.f32.mrf.mxu0 }
 0x48f   : > { %v3550_v47 = vpop.f32.mrf.mxu0 }
 0x490   : > { %v3131_v47 = vld [vmem:[#allocation10 + $0x8] sm:$0xff] }
 0x49e   : > { %v2376_v57 = vpop.f32.mrf.mxu1 }
 0x4a0   : > { %v3555_v24 = vpop.f32.mrf.mxu1 }
 0x4a2   : > { %v2522_v50 = vpop.f32.mrf.mxu1 }
 0x4a3   : > { %v2834_v3 = vcombine.low %v2376_v57, %v2522_v50  ;;  %v2835_v48 = vcombine.high %v2376_v57, %v2522_v50 }
 0x4a4   : > { %v3565_v2 = vpop.f32.mrf.mxu1 }
 0x4a5   : > { %v2842_v8 = vrot.slane %v2834_v3, %v4262_v36  ;;  %v2849_v9 = vrot.slane %v2835_v48, %v4262_v36 }
 0x4d8   : > { %v2449_v4 = vpop.f32.mrf.mxu0 }
 0x4d9   : > { %v2818_v5 = vcombine.low %v2303_v20, %v2449_v4  ;;  %v2819_v6 = vcombine.high %v2303_v20, %v2449_v4  ;;  %v3132_v20 = vld [vmem:[#allocation10 + $0x10] sm:$0xff] }
 0x4da   : > { %v3560_v7 = vpop.f32.mrf.mxu0  ;;  %3589 = vmatpush3.msra.mxu0 %v3132_v20 }
 0x4db   : > { %v2826_v10 = vrot.slane %v2818_v5, %v4262_v36  ;;  %v2833_v11 = vrot.slane %v2819_v6, %v4262_v36  ;;  %3590 = vmatprep.subr.mxu0 %v3949_v0 }
 0x4dc   : > { %3591 = vmatpush3.msra.mxu0 %v3131_v47 }
 0x4dd   : > { %v2882_v12 = vcombine.low %v2826_v10, %v2842_v8  ;;  %v2883_v13 = vcombine.high %v2826_v10, %v2842_v8  ;;  %v2898_v14 = vcombine.low %v2833_v11, %v2849_v9  ;;  %v2899_v15 = vcombine.high %v2833_v11, %v2849_v9  ;;  %3592 = vmatprep.subr.mxu0 %v3949_v0 }
 0x4de   : > { %v2595_v17 = vpop.f32.mrf.mxu0  ;;  %v2668_v18 = vpop.f32.mrf.mxu1 }
 0x4df   : > { %v2890_v19 = vrot.slane %v2882_v12, %v4264_v43  ;;  %v2897_v21 = vrot.slane %v2883_v13, %v4264_v43  ;;  %v2906_v22 = vrot.slane %v2898_v14, %v4264_v43  ;;  %v2913_v23 = vrot.slane %v2899_v15, %v4264_v43  ;;  %v3130_v13 = vld [vmem:[#allocation10] sm:$0xff] }
 0x4e0   : > { %v3570_v25 = vpop.f32.mrf.mxu0  ;;  %v3575_v26 = vpop.f32.mrf.mxu1  ;;  %3593 = vmatpush3.msra.mxu0 %v3130_v13 }
 0x4e1   : > { %v3407_v27 = vcombine.low %v2890_v19, %v2897_v21  ;;  %v3409_v28 = vcombine.high %v2890_v19, %v2897_v21  ;;  %v3411_v29 = vcombine.low %v2906_v22, %v2913_v23  ;;  %v3413_v31 = vcombine.high %v2906_v22, %v2913_v23 }
 0x4e2   : > { %v2741_v32 = vpop.f32.mrf.mxu0  ;;  %v2814_v33 = vpop.f32.mrf.mxu1 }
 0x4e3   : > { %v2850_v34 = vcombine.low %v2595_v17, %v2741_v32  ;;  %v2851_v35 = vcombine.high %v2595_v17, %v2741_v32  ;;  %v2866_v37 = vcombine.low %v2668_v18, %v2814_v33  ;;  %v2867_v38 = vcombine.high %v2668_v18, %v2814_v33 }
 0x4e4   : > { %v3580_v40 = vpop.f32.mrf.mxu0  ;;  %v3585_v41 = vpop.f32.mrf.mxu1  ;;  %v2962_v44 = vrot.slane %v3407_v27, %v4262_v36  ;;  %v2978_v45 = vrot.slane %v3409_v28, %v4262_v36  ;;  %v2994_v46 = vrot.slane %v3411_v29, %v4262_v36  ;;  %v3010_v49 = vrot.slane %v3413_v31, %v4262_v36 }
 0x4e5   : > { %v2858_v51 = vrot.slane %v2850_v34, %v4262_v36  ;;  %v2865_v52 = vrot.slane %v2851_v35, %v4262_v36  ;;  %v2874_v53 = vrot.slane %v2866_v37, %v4262_v36  ;;  %v2881_v54 = vrot.slane %v2867_v38, %v4262_v36 }
 0x4e6   : > { %v3019_v55 = vcombine.high %v2962_v44, %v2978_v45  ;;  %v3051_v56 = vcombine.high %v2994_v46, %v3010_v49  ;;  %v3018_v58 = vcombine.low %v2962_v44, %v2978_v45  ;;  %v3050_v59 = vcombine.low %v2994_v46, %v3010_v49  ;;  %v3415_v45 = vld [vmem:[%s4625_s8] ss:$0 sm:$0xff] }
 0x4e7   : > { %v2914_v16 = vcombine.low %v2858_v51, %v2874_v53  ;;  %v2915_v30 = vcombine.high %v2858_v51, %v2874_v53  ;;  %v2930_v42 = vcombine.low %v2865_v52, %v2881_v54  ;;  %v2931_v60 = vcombine.high %v2865_v52, %v2881_v54 }
 0x4e8   : > { %v3033_v61 = vrot.slane %v3019_v55, %v4264_v43  ;;  %v3065_v62 = vrot.slane %v3051_v56, %v4264_v43  ;;  %v3026_v63 = vrot.slane %v3018_v58, %v4264_v43  ;;  %v3058_v1 = vrot.slane %v3050_v59, %v4264_v43 }
 0x4e9   : > { %v2922_v57 = vrot.slane %v2914_v16, %v4264_v43  ;;  %v2929_v24 = vrot.slane %v2915_v30, %v4264_v43  ;;  %v2938_v50 = vrot.slane %v2930_v42, %v4264_v43  ;;  %v2945_v2 = vrot.slane %v2931_v60, %v4264_v43 }
 0x4ea   : > { %v3084_v3 = vcombine.low %v3033_v61, %v3065_v62  ;;  %v3083_v48 = vcombine.high %v3026_v63, %v3058_v1  ;;  %v3082_v4 = vcombine.low %v3026_v63, %v3058_v1  ;;  %v3085_v14 = vcombine.high %v3033_v61, %v3065_v62 }
 0x4eb   : > { %v3408_v5 = vcombine.low %v2922_v57, %v2929_v24  ;;  %v3410_v6 = vcombine.high %v2922_v57, %v2929_v24  ;;  %v3412_v7 = vcombine.low %v2938_v50, %v2945_v2  ;;  %v3414_v8 = vcombine.high %v2938_v50, %v2945_v2 }
 0x4ec   : > { %3095 = vrot.lane.b32.xlu0 %v3084_v3, %s3960_s7  ;;  %3091 = vrot.lane.b32.xlu1 %v3083_v48, %s3961_s1  ;;  %s4579_s7 = scalar_lea.hbm %s4626_s9, %s3418_s18  ;;  %s3216_s1 = scalar_lea.sflag [#allocation4], %s4182_s2 }
 0x4ed   : > { %v2969_v9 = vrot.slane %v3408_v5, %v4262_v36  ;;  %v2985_v10 = vrot.slane %v3410_v6, %v4262_v36  ;;  %v3001_v11 = vrot.slane %v3412_v7, %v4262_v36  ;;  %v3017_v12 = vrot.slane %v3414_v8, %v4262_v36 }
 0x4ef   : > { %v3034_v15 = vcombine.low %v2969_v9, %v2985_v10  ;;  %v3066_v17 = vcombine.low %v3001_v11, %v3017_v12  ;;  %v3035_v18 = vcombine.high %v2969_v9, %v2985_v10  ;;  %v3067_v19 = vcombine.high %v3001_v11, %v3017_v12 }
 0x4f0   : > { %3099 = vrot.lane.b32.xlu1 %v3085_v14, %s3962_s16  ;;  %s3868_s16 = scalar_lea.vmem %s3230_s13, 128 }
 0x4f1   : > { %v3042_v21 = vrot.slane %v3034_v15, %v4264_v43  ;;  %v3074_v22 = vrot.slane %v3066_v17, %v4264_v43  ;;  %v3049_v26 = vrot.slane %v3035_v18, %v4264_v43  ;;  %v3081_v36 = vrot.slane %v3067_v19, %v4264_v43  ;;  %p3869_p8 = scmp.ne.s32.totalorder %s3230_s13, %s3868_s16 }
 0x4f3   : > { %v3087_v23 = vcombine.high %v3042_v21, %v3074_v22  ;;  %v3086_v25 = vcombine.low %v3042_v21, %v3074_v22  ;;  %v3089_v0 = vcombine.high %v3049_v26, %v3081_v36  ;;  %v3088_v27 = vcombine.low %v3049_v26, %v3081_v36  ;;  %p3870_p10 = pnand %p3869_p8, %p4652_p7 }
 0x4f5   : > { %3107 = vrot.lane.b32.xlu1 %v3087_v23, %s3963_s23  ;;  %3103 = vrot.lane.b32.xlu0 %v3086_v25, %s3964_s25  ;;  %p3871_p0 = pneg %p3870_p10  ;;  %s3874_s23 = scalar_lea.vmem %s3873_s20, 256 }
 0x4f6   : > { %p3876_p2 = scmp.lt.s32.totalorder %s3874_s23, %s3868_s16 }
 0x4f8   : > { %p3877_p9 = por %p3876_p2, %p3875_p12 }
 0x4f9   : > { %3115 = vrot.lane.b32.xlu1 %v3089_v0, %s3965_s27  ;;  %3111 = vrot.lane.b32.xlu0 %v3088_v27, %s3966_s28 }
 0x4fa   : > { %p3878_p11 = pnand %p3877_p9, %p3871_p0 }
 0x55e   : > { %v3092_v28 = vpop.permute.xlu1 %3091  ;;  %v3096_v29 = vpop.permute.xlu0 %3095 }
 0x55f   : > { %v3118_v31 = vsel %vm1536_vm2, %v3082_v4, %v3092_v28 }
 0x560   : > { %v3119_v43 = vsel %vm2145_vm3, %v3118_v31, %v3096_v29 }
 0x562   : > { %v3100_v32 = vpop.permute.xlu1 %3099 }
 0x563   : > { %v3121_v33 = vsel %vm3120_vm4, %v3119_v43, %v3100_v32 }
 0x567   : > { %v3108_v34 = vpop.permute.xlu1 %3107  ;;  %v3104_v35 = vpop.permute.xlu0 %3103 }
 0x568   : > { %v3123_v37 = vsel %vm3122_vm5, %v3121_v33, %v3104_v35 }
 0x569   : > { %v3125_v39 = vsel %vm3124_vm6, %v3123_v37, %v3108_v34 }
 0x56b   : > { %v3116_v38 = vpop.permute.xlu1 %3115  ;;  %v3112_v40 = vpop.permute.xlu0 %3111 }
 0x56c   : > { %v3127_v41 = vsel %vm3126_vm7, %v3125_v39, %v3112_v40 }
 0x56d   : > { %v3129_v44 = vsel %vm3128_vm8, %v3127_v41, %v3116_v38 }
 0x56e   : > { %3595 = vmatmul.mubr.msk.f32.vlgmr.msra.gmra.mxu0 %vm418_vm1, %v3129_v44 }
 0x62e   : > { %v3210_v46 = vpop.f32.mrf.mxu0 }
 0x62f   : > { %v3211_v49 = vadd.f32 %v3415_v45, %v3210_v46 }
 0x630   : > { %v3596_v51 = vpop.f32.mrf.mxu0 }
 0x631   : > { %3214 = vst.msk [vmem:[%s405_s19] sm:$0xff] %vm418_vm1, %v3211_v49 }
 0x632   : > { %3881 = shalt.err (!%p3878_p11)
}
 0x633   : > { %s3882_s25 = scalar_lea.hbm %s4579_s7, 128  ;;  %s3886_s28 = scalar_lea.hbm %s4626_s9, 256 }
 0x634   : > { %p3883_p13 = scmp.ne.s32.totalorder %s4579_s7, %s3882_s25  ;;  %p3887_p4 = scmp.lt.s32.totalorder %s4579_s7, %s4626_s9 }
 0x635   : > { %p3888_p6 = scmp.lt.s32.totalorder %s3886_s28, %s3882_s25 }
 0x636   : > { %p3884_p1 = pnand %p3883_p13, %p4652_p7 }
 0x637   : > { %p3889_p5 = por %p3888_p6, %p3887_p4 }
 0x638   : > { %p3885_p3 = pneg %p3884_p1 }
 0x63a   : > { %p3890_p8 = pnand %p3889_p5, %p3885_p3 }
 0x63c   : > { %3893 = shalt.err (!%p3890_p8)
}
 0x63d   : > { %3615 = dma.vmem_to_hbm [thread:$0]  (%p4652_p7), %s3230_s13, 128, %s4579_s7, %s3216_s1  }
 0x63e PF: > { %s3241_s18 = sand.u32 1, %s3928_s30   ;;  %p4653_p10 = scmp.ne.s32.totalorder %s4644_s17, 0 }
 0x63f   : > { %p4654_p0 = scmp.ge.s32.totalorder %s3940_s12, 2  ;;  %s3242_s19 = scalar_lea.sflag [#allocation4], %s3241_s18 }
 0x641   : > { %p3635_p12 = pnand %p4654_p0, %p4653_p10 }
 0x643   : > { %p3636_p2 = pneg %p3635_p12 }
 0x645   : > { %3923 = dma.done.wait (%p3636_p2), %s3242_s19, 128  }
 0x646   : > { %3925 = vsyncadd (%p3636_p2), %s3242_s19, 4294967168  ;;  %p24_p9 = scmp.ge.s32.totalorder %s4119_s26, 4   ;;  %s4655_s30 = smov %s3932_s10 }
 0x647   : > { %s4656_s10 = smov %s3936_s11  ;;  %s4657_s11 = smov %s4130_s29 }
 0x648   : > { %s4658_s12 = smov %s4119_s26  ;;  %26 = sbr.rel (!%p24_p9) target bundleno = 12 (0xc), region = 117 }
 0x64d   :  { %3247 = vsyncpa [#allocation3], 1 }
 0x64e   :  { %3249 = vsyncpa [#allocation3 + $0x1], 1 }
 0x64f   :  { %3250 = vsyncpa [#allocation6], 1 }
 0x650   :  { %3251 = vsyncpa [#allocation9], 1 }
 0x651   :  { %3252 = vsyncpa [#allocation4], 1 }
 0x652   :  { %3254 = vsyncpa [#allocation4 + $0x1], 1 }

</bundles_post_ra>
